<compile_context>
chip_gen: v6e
topology: v6e:2x2x1
jax: 0.10.0
libtpu: 0.0.40
codegen_flags: <defaults>
</compile_context>

<pallas_src>
import math

import jax
import jax.numpy as jnp
from jax.experimental import pallas as pl
from jax.experimental.pallas import tpu as pltpu


def _build_pe(d_model: int, max_len: int = 5000) -> jnp.ndarray:
    """Deterministic sinusoidal positional-encoding table, shape [max_len, d_model]."""
    position = jnp.arange(0, max_len, dtype=jnp.float32)[:, None]            # [max_len, 1]
    div_term = jnp.exp(
        jnp.arange(0, d_model, 2, dtype=jnp.float32) * (-math.log(10000.0) / d_model)
    )                                                                         # [ceil(d/2)]
    pe = jnp.zeros((max_len, d_model), dtype=jnp.float32)
    pe = pe.at[:, 0::2].set(jnp.sin(position * div_term))
    # cos branch has floor(d/2) columns -> slice div_term (handles odd d_model).
    pe = pe.at[:, 1::2].set(jnp.cos(position * div_term[: d_model // 2]))
    return pe


def _pos_enc_kernel(x_ref, pe_ref, o_ref):
    # x_ref: (tB, tL)   pe_ref: (1, tL)  -> broadcast add over the batch sub-block.
    o_ref[...] = (x_ref[...] + pe_ref[...]).astype(o_ref.dtype)


def _choose_tiles(B: int, SD: int, itemsize: int):
    """Pick (tB, tL) with sublane-padding-aware VMEM accounting."""
    sublane = max(8, 32 // itemsize)          # f32 -> 8, bf16 -> 16, int8 -> 32
    tB = B if B <= sublane else sublane       # dtype-aware sublane block (or full B)
    rows_pad = max(tB, sublane)               # physical rows of an x/out tile after padding

    # Double-buffered footprint per grid step (x, out, pe tiles, all sublane-padded):
    #   bytes ~= tL * itemsize * (2*rows_pad  +  2*rows_pad  +  2*sublane)
    budget = 12 * 1024 * 1024                 # well under the 32 MiB scoped VMEM (v7x-safe)
    per_lane = itemsize * (4 * rows_pad + 2 * sublane)
    tL_max = max(128, ((budget // per_lane) // 128) * 128)

    nB = pl.cdiv(B, tB)
    if SD <= tL_max:
        tL = SD                               # whole flattened row fits -> full extent
        # v7x has 2 TensorCores: for large inputs make sure some parallel axis has >= 2
        # blocks so both cores (each with its own HBM path) get work.
        if nB == 1 and B * SD * itemsize >= 2 * 1024 * 1024 and SD > 128:
            tL = max(128, pl.cdiv(pl.cdiv(SD, 2), 128) * 128)
    else:
        tL = tL_max

    # Prefer a tL (128-multiple) that evenly divides SD, so the last lane block is
    # full-width (no masked remainder store) -- but never give up more than 2x tile size.
    if SD % tL != 0 and SD % 128 == 0:
        for cand in range(tL, 127, -128):
            if SD % cand == 0:
                if cand * 2 >= tL:
                    tL = cand
                break

    return tB, tL


@jax.jit
def positional_encoding(x: jnp.ndarray, pe: jnp.ndarray) -> jnp.ndarray:
    """x: [B, S, D], pe: [max_len, D]. Returns x + pe[None, :S] (computed on-TPU)."""
    B, S, D = x.shape
    if S > pe.shape[0]:
        raise ValueError(
            f"sequence length {S} exceeds positional-encoding max_len {pe.shape[0]}"
        )
    SD = S * D

    # Lane-dense 2-D views (pure layout plumbing, fused by XLA under jit).
    x2 = x.reshape(B, SD)
    pe2 = pe[:S].astype(x.dtype).reshape(1, SD)

    tB, tL = _choose_tiles(B, SD, x.dtype.itemsize)
    nL = pl.cdiv(SD, tL)
    nB = pl.cdiv(B, tB)

    out2 = pl.pallas_call(
        _pos_enc_kernel,
        out_shape=jax.ShapeDtypeStruct((B, SD), x.dtype),
        grid_spec=pltpu.PrefetchScalarGridSpec(
            num_scalar_prefetch=0,
            # lane-blocks outer, batch-blocks inner: pe's block index is constant across
            # the inner sweep, so each pe tile is DMA'd exactly once.
            grid=(nL, nB),
            in_specs=[
                pl.BlockSpec((tB, tL), lambda j, i: (i, j)),   # x tile
                pl.BlockSpec((1, tL), lambda j, i: (0, j)),    # pe tile (batch-broadcast)
            ],
            out_specs=pl.BlockSpec((tB, tL), lambda j, i: (i, j)),
        ),
        compiler_params=pltpu.CompilerParams(
            dimension_semantics=("parallel", "parallel"),
            vmem_limit_bytes=32 * 1024 * 1024,
        ),
    )(x2, pe2)

    return out2.reshape(B, S, D)


if __name__ == "__main__":
    # Small shapes consistent with the module: batch=2, seq=8, d_model=32.
    B, S, D = 2, 8, 32
    MAX_LEN = 64

    key = jax.random.PRNGKey(0)
    x = jax.random.normal(key, (B, S, D), dtype=jnp.float32)

    pe = _build_pe(D, MAX_LEN)

    # Reference (pure JAX).
    ref = x + pe[:S][None, :, :]

    out = positional_encoding(x, pe)
    out = jax.block_until_ready(out)

    assert out.shape == (B, S, D)
    assert jnp.allclose(out, ref, atol=1e-6), "mismatch vs reference"

    print("KERNEL_OK")
</pallas_src>

<mosaic_0001>
module attributes {stable_mosaic.version = 11 : i64} {
  func.func @_pos_enc_kernel(%arg0: i32, %arg1: i32, %arg2: memref<2x256xf32, #tpu.memory_space<vmem>>, %arg3: memref<1x256xf32, #tpu.memory_space<vmem>>, %arg4: memref<2x256xf32, #tpu.memory_space<vmem>>) attributes {dimension_semantics = [#tpu.dimension_semantics<parallel>, #tpu.dimension_semantics<parallel>], iteration_bounds = array<i64: 1, 1>, scalar_prefetch = 0 : i64, scratch_operands = 0 : i64, tpu.core_type = #tpu.core_type<tc>, window_params = [{transform_indices = @transform_0, window_bounds = array<i64: 2, 256>}, {transform_indices = @transform_1, window_bounds = array<i64: 1, 256>}, {transform_indices = @transform_2, window_bounds = array<i64: 2, 256>}]} {
    %c0 = arith.constant 0 : index
    %c0_0 = arith.constant 0 : index
    %0 = vector.load %arg2[%c0, %c0_0] : memref<2x256xf32, #tpu.memory_space<vmem>>, vector<2x256xf32>
    %c0_1 = arith.constant 0 : index
    %c0_2 = arith.constant 0 : index
    %1 = vector.load %arg3[%c0_1, %c0_2] : memref<1x256xf32, #tpu.memory_space<vmem>>, vector<1x256xf32>
    %2 = vector.broadcast %1 : vector<1x256xf32> to vector<2x256xf32>
    %3 = arith.addf %0, %2 : vector<2x256xf32>
    %c0_3 = arith.constant 0 : index
    %c0_4 = arith.constant 0 : index
    %4 = vector.load %arg4[%c0_3, %c0_4] : memref<2x256xf32, #tpu.memory_space<vmem>>, vector<2x256xf32>
    tpu.vector_store %arg4[%c0_3, %c0_4], %3 {strides = array<i32>} : memref<2x256xf32, #tpu.memory_space<vmem>>, vector<2x256xf32>,
    return
  }
  func.func @transform_0(%arg0: i32, %arg1: i32) -> (i32, i32) {
    %c0_i32 = arith.constant 0 : i32
    return %arg1, %arg0 : i32, i32
  }
  func.func @transform_1(%arg0: i32, %arg1: i32) -> (i32, i32) {
    %c0_i32 = arith.constant 0 : i32
    %c0_i32_0 = arith.constant 0 : i32
    return %c0_i32, %arg0 : i32, i32
  }
  func.func @transform_2(%arg0: i32, %arg1: i32) -> (i32, i32) {
    %c0_i32 = arith.constant 0 : i32
    return %arg1, %arg0 : i32, i32
  }
}

</mosaic_0001>

<bundles_post_ra>
// kernel: positional_encoding.1
= control target key start
LH: loop header
LB: loop body
LE: loop exit
PB: predicated region body
PF: predicated region fallthrough
CT: control target
= control target key end

     0   :  { %v14_v0 = vlaneseq  ;;  %v38_v1 = vmov 1983009808   ;;  %s63_s1 = inlined_call_operand.vmem [shape: f32[1,256], index: 1, kind: input, shape index: {}]   ;;  %s64_s0 = inlined_call_operand.vmem [shape: f32[2,256], index: 0, kind: input, shape index: {}]   ;;  %s65_s2 = inlined_call_operand.vmem [shape: f32[2,256], index: 2, kind: output, shape index: {}]  }
   0x1   :  { %v24_v2 = vunpack.c.l.s4 %v38_v1  ;;  %v12_v4 = vld [vmem:[%s63_s1] sm:$0x3] }
   0x2   :  { %v15_v3 = vshrl.u32 %v14_v0, 7  ;;  %v11_v12 = vld [vmem:[%s64_s0] sm:$0xf] }
   0x3   :  { %v25_v5 = vunpack.c.0.s8 %v24_v2 }
   0x4   :  { %v16_v6 = vsub.s32 0, %v15_v3  ;;  %v20_v7 = vsub.s32 1, %v15_v3 }
   0x5   :  { %v28_v10 = vsub.s32 %v25_v5, %v15_v3 }
   0x6   :  { %v17_v8 = vrot.slane %v12_v4, %v16_v6  ;;  %v21_v9 = vrot.slane %v12_v4, %v20_v7 }
   0x8   :  { %v22_v11 = vcombine.low %v17_v8, %v21_v9 }
   0xa   :  { %v29_v13 = vrot.slane %v22_v11, %v28_v10 }
   0xc   :  { %v31_v14 = vadd.f32 %v29_v13, %v11_v12 }
   0xe   :  { %32 = vst [vmem:[%s65_s2] sm:$0xf] %v31_v14 }

</bundles_post_ra>
